<compile_context>
chip_gen: v5e
topology: v5e:2x2
jax: 0.10.0
libtpu: 0.0.40
codegen_flags: <defaults>
</compile_context>

<pallas_src>
import functools

import jax
import jax.numpy as jnp
from jax import lax
from jax.experimental import pallas as pl
from jax.experimental.pallas import tpu as pltpu

IN_FEATURES = 15
PADDED_IN = 16     # bf16 sublane-pair aligned contraction dim (zero-padded column)
HIDDEN = 128


def _round_up(n: int, m: int) -> int:
    return ((n + m - 1) // m) * m


def _default_chunk() -> int:
    # v6e/v7x MXUs are 2x256x256 -> chunk=256 fills M on the dominant 128x128 layer;
    # v2-v5 MXUs are 128-wide, so chunk=128 already matches (and keeps vreg pressure low).
    try:
        kind = jax.devices()[0].device_kind.lower()
    except Exception:
        return 256
    if any(g in kind for g in ("v2", "v3", "v4", "v5")):
        return 128
    return 256


def mlp_kernel(x_ref, w1_ref, b1_ref, w2_ref, b2_ref, w3t_ref, b3_ref, o_ref, *, chunk):
    """One batch tile of the fused 3-layer MLP.

    x_ref : (tile_b, 16) bf16   w1: (16,128) bf16   w2: (128,128) bf16   w3t: (1,128) bf16
    b1/b2 : (1,128) f32         b3: (1,1) f32
    o_ref : (1, tile_b) f32  -- batch along lanes => unmasked lane-dense stores.
    """
    # Weights/biases hoisted out of the chunk loop; they stay vreg/VMEM-resident per tile.
    w1 = w1_ref[...]
    b1 = b1_ref[...]
    w2 = w2_ref[...]
    b2 = b2_ref[...]
    w3t = w3t_ref[...]
    b3 = b3_ref[...]

    def compute(xc):
        # xc: (chunk, 16) bf16. bf16 MXU operands, f32 accumulation, f32 bias/ReLU
        # (v5e VPU has no bf16 elementwise, so activations stay f32 until the next dot).
        h1 = jnp.dot(xc, w1, preferred_element_type=jnp.float32) + b1
        h1 = jnp.maximum(h1, 0.0).astype(jnp.bfloat16)                 # (chunk, 128)
        h2 = jnp.dot(h1, w2, preferred_element_type=jnp.float32) + b2
        h2 = jnp.maximum(h2, 0.0).astype(jnp.bfloat16)                 # (chunk, 128)
        # Final layer with NT dimension numbers: (1,128) . (chunk,128)^T -> (1, chunk).
        # Lane-dense result, no materialized per-chunk transpose.
        oc = lax.dot_general(w3t, h2, (((1,), (1,)), ((), ())),
                             preferred_element_type=jnp.float32) + b3
        return oc

    tile_b = x_ref.shape[0]
    n_chunks = tile_b // chunk

    if n_chunks == 1:                      # static Python branch: tiny-batch path
        o_ref[...] = compute(x_ref[...]).astype(o_ref.dtype)
    else:
        def body(c, carry):
            off = pl.multiple_of(c * chunk, chunk)   # aligned => unmasked vld/vst
            oc = compute(x_ref[pl.ds(off, chunk), :])
            o_ref[:, pl.ds(off, chunk)] = oc.astype(o_ref.dtype)
            return carry

        lax.fori_loop(0, n_chunks, body, 0, unroll=2)


def prepare_params(params):
    """Cast matmul operands to bf16 once (accumulation stays f32 on the MXU) and
    zero-pad w1's contraction dim 15 -> 16. Biases stay f32."""
    w1, b1, w2, b2, w3t, b3 = params
    w1p = jnp.pad(w1, ((0, PADDED_IN - w1.shape[0]), (0, 0))).astype(jnp.bfloat16)
    return (w1p, b1, w2.astype(jnp.bfloat16), b2, w3t.astype(jnp.bfloat16), b3)


def mlp_forward(x, prepared_params, *, tile_b=4096, chunk=None):
    """x: (batch, 15) f32 -> (batch,) f32, matching PyTorch `self.predict(...)[:, 0]`."""
    w1, b1, w2, b2, w3t, b3 = prepared_params
    batch, feat = x.shape
    assert feat == IN_FEATURES

    if chunk is None:
        chunk = _default_chunk()

    if batch <= chunk:
        # Tiny batch: single exact-size tile, one chunk, no useless padding.
        tile_b = _round_up(max(batch, 1), 8)
        chunk = tile_b
    else:
        # >= 2 chunk-aligned tiles (so ("parallel",) uses both TCs on v7x), capped at
        # tile_b so the double-buffered blocks stay tiny relative to VMEM.
        half = _round_up(-(-batch // 2), chunk)
        tile_b = min(_round_up(tile_b, chunk), max(chunk, half))
    assert tile_b % chunk == 0 and tile_b % 8 == 0

    b_pad = _round_up(batch, tile_b)
    num_tiles = b_pad // tile_b
    # Cast to bf16 (MXU-native) and zero-pad batch -> b_pad, features 15 -> 16 (one XLA op).
    xk = jnp.pad(x.astype(jnp.bfloat16), ((0, b_pad - batch), (0, PADDED_IN - feat)))

    weight_bytes = (PADDED_IN * HIDDEN + HIDDEN * HIDDEN + HIDDEN) * 2 \
                   + (HIDDEN + HIDDEN + 1) * 4
    cost = pl.CostEstimate(
        flops=2 * b_pad * (PADDED_IN * HIDDEN + HIDDEN * HIDDEN + HIDDEN),
        transcendentals=0,
        bytes_accessed=b_pad * PADDED_IN * 2 + b_pad * 4 + weight_bytes,
    )

    out = pl.pallas_call(
        functools.partial(mlp_kernel, chunk=chunk),
        out_shape=jax.ShapeDtypeStruct((1, b_pad), jnp.float32),
        grid=(num_tiles,),
        in_specs=[
            pl.BlockSpec((tile_b, PADDED_IN), lambda i: (i, 0)),  # x: streamed per batch tile
            pl.BlockSpec(w1.shape, lambda i: (0, 0)),             # weights/biases stay resident
            pl.BlockSpec(b1.shape, lambda i: (0, 0)),
            pl.BlockSpec(w2.shape, lambda i: (0, 0)),
            pl.BlockSpec(b2.shape, lambda i: (0, 0)),
            pl.BlockSpec(w3t.shape, lambda i: (0, 0)),
            pl.BlockSpec(b3.shape, lambda i: (0, 0)),
        ],
        out_specs=pl.BlockSpec((1, tile_b), lambda i: (0, i)),    # lane-dense output row
        compiler_params=pltpu.CompilerParams(
            dimension_semantics=("parallel",),                    # shard batch tiles across TCs
        ),
        cost_estimate=cost,
    )(xk, w1, b1, w2, b2, w3t, b3)

    return out[0, :batch]


def init_params(key):
    """Deterministic init mimicking nn.Linear default U(-1/sqrt(fan_in), +1/sqrt(fan_in))."""
    def linear(key, fan_in, fan_out):
        kw, kb = jax.random.split(key)
        bound = float(1.0 / (fan_in ** 0.5))
        # Stored as (in, out) so the kernel computes x @ W + b directly.
        w = jax.random.uniform(kw, (fan_in, fan_out), jnp.float32, -bound, bound)
        b = jax.random.uniform(kb, (1, fan_out), jnp.float32, -bound, bound)
        return w, b

    k1, k2, k3 = jax.random.split(key, 3)
    w1, b1 = linear(k1, IN_FEATURES, HIDDEN)
    w2, b2 = linear(k2, HIDDEN, HIDDEN)
    w3, b3 = linear(k3, HIDDEN, 1)
    # Last layer kept in (out, in) = (1, 128) layout for the lane-dense kernel output.
    w3t = w3.T                     # (1, 128)
    b3 = b3.reshape(1, 1)          # (1, 1)
    return (w1, b1, w2, b2, w3t, b3)


if __name__ == "__main__":
    key = jax.random.PRNGKey(0)
    kx, kp = jax.random.split(key)
    params = init_params(kp)
    w1, b1, w2, b2, w3t, b3 = params
    prepared = prepare_params(params)

    def ref_forward(x):
        # Reference with the same bf16-operand / f32-accumulate numerics as the kernel.
        # TODO(synk): the bf16 operand cast trades a little accuracy vs. the f32 PyTorch model.
        cast = lambda a: a.astype(jnp.bfloat16)
        h1 = jnp.maximum(jnp.dot(cast(x), cast(w1), preferred_element_type=jnp.float32) + b1, 0.0)
        h2 = jnp.maximum(jnp.dot(cast(h1), cast(w2), preferred_element_type=jnp.float32) + b2, 0.0)
        o = jnp.dot(cast(h2), cast(w3t).T, preferred_element_type=jnp.float32) + b3
        return o[:, 0]

    # Small batch: single exact-size tile (n_chunks == 1 path), no padding.
    x_small = jax.random.normal(kx, (8, 15), jnp.float32)
    y_small = mlp_forward(x_small, prepared)
    jax.block_until_ready(y_small)
    assert y_small.shape == (8,)
    assert jnp.allclose(y_small, ref_forward(x_small), atol=5e-3, rtol=5e-3)

    # Larger batch: exercises the 2-tile parallel grid, batch/feature padding, and the
    # fori_loop chunk path with dynamic lane-aligned stores.
    x_big = jax.random.normal(kx, (600, 15), jnp.float32)
    y_big = mlp_forward(x_big, prepared)
    jax.block_until_ready(y_big)
    assert y_big.shape == (600,)
    assert jnp.allclose(y_big, ref_forward(x_big), atol=5e-3, rtol=5e-3)

    print("KERNEL_OK")
</pallas_src>

<mosaic_0001>
module attributes {stable_mosaic.version = 11 : i64} {
  func.func @mlp_kernel(%arg0: i32, %arg1: memref<8x16xbf16, #tpu.memory_space<vmem>>, %arg2: memref<16x128xbf16, #tpu.memory_space<vmem>>, %arg3: memref<1x128xf32, #tpu.memory_space<vmem>>, %arg4: memref<128x128xbf16, #tpu.memory_space<vmem>>, %arg5: memref<1x128xf32, #tpu.memory_space<vmem>>, %arg6: memref<1x128xbf16, #tpu.memory_space<vmem>>, %arg7: memref<1x1xf32, #tpu.memory_space<vmem>>, %arg8: memref<1x8xf32, #tpu.memory_space<vmem>>) attributes {dimension_semantics = [#tpu.dimension_semantics<parallel>], iteration_bounds = array<i64: 1>, scalar_prefetch = 0 : i64, scratch_operands = 0 : i64, tpu.core_type = #tpu.core_type<tc>, window_params = [{transform_indices = @transform_0, window_bounds = array<i64: 8, 16>}, {pipeline_mode = #tpu.pipeline_mode<synchronous>, transform_indices = @transform_1, window_bounds = array<i64: 16, 128>}, {pipeline_mode = #tpu.pipeline_mode<synchronous>, transform_indices = @transform_2, window_bounds = array<i64: 1, 128>}, {pipeline_mode = #tpu.pipeline_mode<synchronous>, transform_indices = @transform_3, window_bounds = array<i64: 128, 128>}, {pipeline_mode = #tpu.pipeline_mode<synchronous>, transform_indices = @transform_4, window_bounds = array<i64: 1, 128>}, {pipeline_mode = #tpu.pipeline_mode<synchronous>, transform_indices = @transform_5, window_bounds = array<i64: 1, 128>}, {pipeline_mode = #tpu.pipeline_mode<synchronous>, transform_indices = @transform_6, window_bounds = array<i64: 1, 1>}, {transform_indices = @transform_7, window_bounds = array<i64: 1, 8>}]} {
    %c0 = arith.constant 0 : index
    %c0_0 = arith.constant 0 : index
    %0 = vector.load %arg2[%c0, %c0_0] : memref<16x128xbf16, #tpu.memory_space<vmem>>, vector<16x128xbf16>
    %c0_1 = arith.constant 0 : index
    %c0_2 = arith.constant 0 : index
    %1 = vector.load %arg3[%c0_1, %c0_2] : memref<1x128xf32, #tpu.memory_space<vmem>>, vector<1x128xf32>
    %c0_3 = arith.constant 0 : index
    %c0_4 = arith.constant 0 : index
    %2 = vector.load %arg4[%c0_3, %c0_4] : memref<128x128xbf16, #tpu.memory_space<vmem>>, vector<128x128xbf16>
    %c0_5 = arith.constant 0 : index
    %c0_6 = arith.constant 0 : index
    %3 = vector.load %arg5[%c0_5, %c0_6] : memref<1x128xf32, #tpu.memory_space<vmem>>, vector<1x128xf32>
    %c0_7 = arith.constant 0 : index
    %c0_8 = arith.constant 0 : index
    %4 = vector.load %arg6[%c0_7, %c0_8] : memref<1x128xbf16, #tpu.memory_space<vmem>>, vector<1x128xbf16>
    %c0_9 = arith.constant 0 : index
    %c0_10 = arith.constant 0 : index
    %5 = vector.load %arg7[%c0_9, %c0_10] : memref<1x1xf32, #tpu.memory_space<vmem>>, vector<1x1xf32>
    %c0_11 = arith.constant 0 : index
    %c0_12 = arith.constant 0 : index
    %6 = vector.load %arg1[%c0_11, %c0_12] : memref<8x16xbf16, #tpu.memory_space<vmem>>, vector<8x16xbf16>
    %cst = arith.constant dense<0.000000e+00> : vector<8x128xf32>
    %7 = tpu.matmul %6, %0, %cst {dimension_numbers = #tpu.dot_dimension_numbers<[1], [0], [0], [1], [0, 0, 1, 1], [], []>} : vector<8x16xbf16>, vector<16x128xbf16>, vector<8x128xf32> -> vector<8x128xf32>
    %8 = vector.broadcast %1 : vector<1x128xf32> to vector<8x128xf32>
    %9 = arith.addf %7, %8 : vector<8x128xf32>
    %cst_13 = arith.constant 0.000000e+00 : f32
    %10 = vector.broadcast %cst_13 : f32 to vector<8x128xf32>
    %11 = arith.maximumf %9, %10 : vector<8x128xf32>
    %12 = arith.truncf %11 : vector<8x128xf32> to vector<8x128xbf16>
    %cst_14 = arith.constant dense<0.000000e+00> : vector<8x128xf32>
    %13 = tpu.matmul %12, %2, %cst_14 {dimension_numbers = #tpu.dot_dimension_numbers<[1], [0], [0], [1], [0, 0, 1, 1], [], []>} : vector<8x128xbf16>, vector<128x128xbf16>, vector<8x128xf32> -> vector<8x128xf32>
    %14 = vector.broadcast %3 : vector<1x128xf32> to vector<8x128xf32>
    %15 = arith.addf %13, %14 : vector<8x128xf32>
    %cst_15 = arith.constant 0.000000e+00 : f32
    %16 = vector.broadcast %cst_15 : f32 to vector<8x128xf32>
    %17 = arith.maximumf %15, %16 : vector<8x128xf32>
    %18 = arith.truncf %17 : vector<8x128xf32> to vector<8x128xbf16>
    %cst_16 = arith.constant dense<0.000000e+00> : vector<1x8xf32>
    %19 = tpu.matmul %4, %18, %cst_16 {dimension_numbers = #tpu.dot_dimension_numbers<[1], [1], [0], [0], [0, 0, 1, 0], [], []>} : vector<1x128xbf16>, vector<8x128xbf16>, vector<1x8xf32> -> vector<1x8xf32>
    %20 = vector.broadcast %5 : vector<1x1xf32> to vector<1x8xf32>
    %21 = arith.addf %19, %20 : vector<1x8xf32>
    %c0_17 = arith.constant 0 : index
    %c0_18 = arith.constant 0 : index
    %22 = vector.load %arg8[%c0_17, %c0_18] : memref<1x8xf32, #tpu.memory_space<vmem>>, vector<1x8xf32>
    tpu.vector_store %arg8[%c0_17, %c0_18], %21 {strides = array<i32>} : memref<1x8xf32, #tpu.memory_space<vmem>>, vector<1x8xf32>,
    return
  }
  func.func @transform_0(%arg0: i32) -> (i32, i32) {
    %c0_i32 = arith.constant 0 : i32
    %c0_i32_0 = arith.constant 0 : i32
    return %arg0, %c0_i32 : i32, i32
  }
  func.func @transform_1(%arg0: i32) -> (i32, i32) {
    %c0_i32 = arith.constant 0 : i32
    %c0_i32_0 = arith.constant 0 : i32
    %c0_i32_1 = arith.constant 0 : i32
    return %c0_i32, %c0_i32_0 : i32, i32
  }
  func.func @transform_2(%arg0: i32) -> (i32, i32) {
    %c0_i32 = arith.constant 0 : i32
    %c0_i32_0 = arith.constant 0 : i32
    %c0_i32_1 = arith.constant 0 : i32
    return %c0_i32, %c0_i32_0 : i32, i32
  }
  func.func @transform_3(%arg0: i32) -> (i32, i32) {
    %c0_i32 = arith.constant 0 : i32
    %c0_i32_0 = arith.constant 0 : i32
    %c0_i32_1 = arith.constant 0 : i32
    return %c0_i32, %c0_i32_0 : i32, i32
  }
  func.func @transform_4(%arg0: i32) -> (i32, i32) {
    %c0_i32 = arith.constant 0 : i32
    %c0_i32_0 = arith.constant 0 : i32
    %c0_i32_1 = arith.constant 0 : i32
    return %c0_i32, %c0_i32_0 : i32, i32
  }
  func.func @transform_5(%arg0: i32) -> (i32, i32) {
    %c0_i32 = arith.constant 0 : i32
    %c0_i32_0 = arith.constant 0 : i32
    %c0_i32_1 = arith.constant 0 : i32
    return %c0_i32, %c0_i32_0 : i32, i32
  }
  func.func @transform_6(%arg0: i32) -> (i32, i32) {
    %c0_i32 = arith.constant 0 : i32
    %c0_i32_0 = arith.constant 0 : i32
    %c0_i32_1 = arith.constant 0 : i32
    return %c0_i32, %c0_i32_0 : i32, i32
  }
  func.func @transform_7(%arg0: i32) -> (i32, i32) {
    %c0_i32 = arith.constant 0 : i32
    %c0_i32_0 = arith.constant 0 : i32
    return %c0_i32, %arg0 : i32, i32
  }
}

</mosaic_0001>

<bundles_post_ra>
// kernel: tpu_custom_call.1
= control target key start
LH: loop header
LB: loop body
LE: loop exit
PB: predicated region body
PF: predicated region fallthrough
CT: control target
= control target key end

     0   :  { %s460_s0 = inlined_call_operand.hbm [shape: bf16[8,16], index: 0, kind: input, shape index: {}]   ;;  %s461_s1 = inlined_call_operand.hbm [shape: bf16[16,128], index: 1, kind: input, shape index: {}]   ;;  %s462_s2 = inlined_call_operand.vmem [shape: f32[1,128], index: 2, kind: input, shape index: {}]   ;;  %s463_s3 = inlined_call_operand.hbm [shape: bf16[128,128], index: 3, kind: input, shape index: {}]   ;;  %s464_s4 = inlined_call_operand.vmem [shape: f32[1,128], index: 4, kind: input, shape index: {}]   ;;  %s465_s5 = inlined_call_operand.vmem [shape: bf16[1,128], index: 5, kind: input, shape index: {}]   ;;  %s466_s6 = inlined_call_operand.<no memory space> [shape: f32[1,1], index: 6, kind: input, shape index: {}]   ;;  %s467_s7 = inlined_call_operand.hbm [shape: f32[1,8], index: 7, kind: output, shape index: {}]  }
   0x1   :  { %v12_v0 = vstv %s466_s6 }
   0x2   :  { %13 = vst [vmem:[#allocation2] sm:$0x1] %v12_v0 }
   0x3   :  { %14 = vsyncpa [#allocation4], 0 }
   0x4   :  { %15 = vsyncpa [#allocation7], 0  ;;  %s32_s28 = sshll.u32 %s461_s1, 4  ;;  %s33_s28 = int_to_ptr.hbm [resolvable:$true] %s32_s28 }
   0x5   :  { %16 = vsyncpa [#allocation5], 0  ;;  %s389_s29 = smov [#allocation6]   ;;  %s22_s10 = sshll.u32 %s460_s0, 4  ;;  %s23_s10 = int_to_ptr.hbm [resolvable:$true] %s22_s10 }
   0x6   :  { %s34_s30 = sshll.u32 %s389_s29, 4  ;;  %s390_s11 = smov 64   ;;  %s35_s30 = int_to_ptr.vmem [resolvable:$true] %s34_s30 }
   0x7   :  { %s391_s12 = smov 4   ;;  %s392_s6 = smov [#allocation3]  }
   0x8   :  { %40 = dma.hbm_to_vmem [thread:$0]  %s33_s28, 128, %s35_s30, [#allocation7], %s390_s11, %s390_s11, %s391_s12  }
   0x9   :  { %s24_s13 = sshll.u32 %s392_s6, 4  ;;  %s47_s16 = sshll.u32 %s463_s3, 4  ;;  %s25_s13 = int_to_ptr.vmem [resolvable:$true] %s24_s13  ;;  %s48_s16 = int_to_ptr.hbm [resolvable:$true] %s47_s16 }
   0xa   :  { %27 = dma.hbm_to_vmem [thread:$0]  %s23_s10, 64, %s25_s13, [#allocation4]  }
   0xb   :  { %s393_s1 = smov [#allocation8]  }
   0xc   :  { %s49_s17 = sshll.u32 %s393_s1, 4  ;;  %s50_s17 = int_to_ptr.vmem [resolvable:$true] %s49_s17 }
   0xd   :  { %55 = dma.hbm_to_vmem [thread:$0]  %s48_s16, 1024, %s50_s17, [#allocation7], %s390_s11, %s390_s11, %s391_s12  }
   0xe   :  { %383 = dma.done.wait [#allocation4], 64  }
   0xf   :  { %384 = vsyncadd [#allocation4], 4294967232 }
  0x10   :  { %385 = dma.done.wait [#allocation7], 1152  }
  0x11   :  { %386 = vsyncadd [#allocation7], 4294966144  ;;  %v268_v1 = vld [vmem:[#allocation6] sm:$0xff]  ;;  %v97_v3 = vld [vmem:[#allocation3] sm:$0xf]  ;;  %vm107_vm0 = vcmask 130048  }
  0x12   :  { %v276_v2 = vld [vmem:[#allocation8 + $0x38] sm:$0xff]  ;;  %118 = vmatpush.bf16.msra.mxu0 %v268_v1  ;;  %v275_v4 = vld [vmem:[#allocation8 + $0x30] sm:$0xff]  ;;  %v274_v5 = vld [vmem:[#allocation8 + $0x28] sm:$0xff]  ;;  %v394_v18 = vmov 0   ;;  %s395_s21 = smov [#allocation9]   ;;  %s220_s25 = sshll.u32 %s467_s7, 4  ;;  %s221_s25 = int_to_ptr.hbm [resolvable:$true] %s220_s25 }
  0x13   :  { %177 = vmatpush.bf16.msra.mxu1 %v276_v2  ;;  %v273_v6 = vld [vmem:[#allocation8 + $0x20] sm:$0xff]  ;;  %v272_v7 = vld [vmem:[#allocation8 + $0x18] sm:$0xff]  ;;  %v271_v8 = vld [vmem:[#allocation8 + $0x10] sm:$0xff]  ;;  %284 = vset.pattern.permute.xlu0 %v394_v18  ;;  %s218_s22 = sshll.u32 %s395_s21, 4  ;;  %vm211_vm1 = vcmask 57344   ;;  %s219_s22 = int_to_ptr.vmem [resolvable:$true] %s218_s22 }
  0x14   :  { %v270_v9 = vld [vmem:[#allocation8 + $0x8] sm:$0xff]  ;;  %v269_v10 = vld [vmem:[#allocation8] sm:$0xff]  ;;  %v285_v11 = vld [vmem:[%s462_s2] ss:$0 sm:$0xff] }
  0x15   :  { %235 = vmatmul.msk.bf16.vlgmr.msra.gmra.mxu0 %vm107_vm0, %v97_v3  ;;  %v96_v17 = vld [vmem:[#allocation2] sm:$0x1] }
  0x16   :  { %194 = vperm.xlu0 %284, %v96_v17   ;;  %v286_v19 = vld [vmem:[%s464_s4] ss:$0 sm:$0xff] }
  0x17   :  { %178 = vmatpush.bf16.msra.mxu1 %v275_v4  ;;  %v95_v25 = vld [vmem:[%s465_s5] sm:$0x1] }
  0x1b   :  { %179 = vmatpush.bf16.msra.mxu1 %v274_v5 }
  0x1f   :  { %180 = vmatpush.bf16.msra.mxu1 %v273_v6 }
  0x23   :  { %181 = vmatpush.bf16.msra.mxu1 %v272_v7 }
  0x27   :  { %182 = vmatpush.bf16.msra.mxu1 %v271_v8 }
  0x2b   :  { %183 = vmatpush.bf16.msra.mxu1 %v270_v9 }
  0x2f   :  { %184 = vmatpush.bf16.msra.mxu1 %v269_v10 }
  0x88   :  { %v195_v26 = vpop.permute.xlu0 %194 }
  0x89   :  { %v197_v27 = vperm.slane %v195_v26, 0 }
  0x92   :  { %v120_v12 = vpop.f32.mrf.mxu0 }
  0x93   :  { %v121_v13 = vadd.f32 %v285_v11, %v120_v12 }
  0x95   :  { %v124_v14 = vmax.f32 %v121_v13, 0.0 }
  0x97   :  { %v125_v15 = vpack.c.bf16 %v124_v14, %v124_v14 }
  0x99   :  { %185 = vmatmul.bf16.vlgmr.msra.gmra.mxu1 %v125_v15 }
  0x9a   :  { %v122_v16 = vpop.f32.mrf.mxu0 }
 0x116   :  { %v186_v20 = vpop.f32.mrf.mxu1 }
 0x117   :  { %v187_v21 = vadd.f32 %v286_v19, %v186_v20 }
 0x119   :  { %v190_v22 = vmax.f32 %v187_v21, 0.0 }
 0x11b   :  { %v191_v23 = vpack.c.bf16 %v190_v22, %v190_v22 }
 0x11d   :  { %205 = vmatpush.bf16.xpose.msra.mxu2 %v191_v23 }
 0x11e   :  { %v188_v24 = vpop.f32.mrf.mxu1 }
 0x124   :  { %206 = vmatmul.bf16.vlgmr.msra.gmra.mxu2 %v95_v25 }
 0x1a7   :  { %v207_v28 = vpop.f32.mrf.mxu2 }
 0x1a8   :  { %v208_v29 = vadd.f32 %v207_v28, %v197_v27 }
 0x1aa   :  { %212 = vst.msk [vmem:[#allocation9] sm:$0x1] %vm211_vm1, %v208_v29 }
 0x1ab   :  { %223 = dma.vmem_to_hbm [thread:$0]  %s219_s22, 16, %s221_s25, [#allocation5]  }
 0x1af   :  { %v209_v30 = vpop.f32.mrf.mxu2 }
 0x1b0   :  { %387 = dma.done.wait [#allocation5], 16  }
 0x1b1   :  { %388 = vsyncadd [#allocation5], 4294967280 }
 0x1b2   :  { %228 = vsyncpa [#allocation4], 1 }
 0x1b3   :  { %229 = vsyncpa [#allocation7], 1 }
 0x1b4   :  { %230 = vsyncpa [#allocation5], 1 }

</bundles_post_ra>
